<compile_context>
chip_gen: v7x
topology: tpu7x:2x2x1
jax: 0.10.0
libtpu: 0.0.40
codegen_flags: <defaults>
</compile_context>

<pallas_src>
import jax
import jax.numpy as jnp
from jax.experimental import pallas as pl
from jax.experimental.pallas import tpu as pltpu


def _complex_relu_kernel(real_ref, imag_ref, out_real_ref, out_imag_ref):
    real = real_ref[...]
    imag = imag_ref[...]
    # Exact PyTorch semantics: mask = 1.0 * (real >= 0); out = mask * x.
    # (Kept as multiply -- not jnp.where -- to preserve 0*NaN propagation.)
    mask = (real >= 0).astype(real.dtype)
    out_real_ref[...] = mask * real
    out_imag_ref[...] = mask * imag


def _sublane_multiple(dtype) -> int:
    # f32 -> 8, bf16 -> 16, int8/fp8 -> 32: keeps packed vregs full.
    return 8 * max(1, 4 // jnp.dtype(dtype).itemsize)


def _lane_dense_view(shape):
    """Pick a (rows, lanes) 2-D lane-dense view of an array with `shape`."""
    total = 1
    for d in shape:
        total *= int(d)
    # Prefer a wide slab whose last dim is a large multiple of 128.
    for lanes in (2048, 1024, 512, 256, 128):
        if total % lanes == 0:
            return total // lanes, lanes
    # Fallback: keep the original trailing dim as the (full-extent) lane axis.
    if len(shape) >= 2:
        lanes = int(shape[-1])
        return total // lanes, lanes
    return 1, total


def complex_relu(real: jax.Array, imag: jax.Array, *,
                 target_tile_bytes: int = 2 << 20):
    """Complex ReLU on float tensors via a Pallas TPU kernel."""
    assert real.shape == imag.shape, "real/imag must have identical shapes"
    assert real.dtype == imag.dtype, "real/imag must have identical dtypes"

    orig_shape = real.shape
    dtype = real.dtype
    itemsize = jnp.dtype(dtype).itemsize

    rows, lanes = _lane_dense_view(orig_shape)
    real2 = real.reshape(rows, lanes)
    imag2 = imag.reshape(rows, lanes)

    sub = _sublane_multiple(dtype)
    row_bytes = lanes * itemsize
    total_bytes = rows * row_bytes

    if total_bytes <= (512 << 10) or rows <= sub:
        # Tiny problem: a single full-array block; grid-step overhead would
        # dominate, and a full-extent block sidesteps (8,128) divisibility.
        block_rows = rows
    else:
        # ~2 MiB tiles, rounded down to the sublane packing multiple.
        block_rows = max(sub, (target_tile_bytes // row_bytes) // sub * sub)
        # Keep a few grid steps (v7x: 2 TCs/chip) but never shrink tiles
        # below ~1 MiB -- that's where grid-step overhead starts to bite.
        min_steps = 4
        while (block_rows * row_bytes > (1 << 20)
               and pl.cdiv(rows, block_rows) < min_steps
               and block_rows > sub):
            block_rows = max(sub, (block_rows // 2) // sub * sub)
        if block_rows >= rows:
            block_rows = rows  # full extent

    grid = (pl.cdiv(rows, block_rows),)
    spec = pl.BlockSpec((block_rows, lanes), lambda i: (i, 0))

    # VMEM budget: (2 inputs + 2 outputs) x double-buffering = 8 x tile.
    tile_bytes = block_rows * row_bytes
    vmem_limit = min(max(8 * tile_bytes + (4 << 20), 16 << 20), 48 << 20)

    out_real, out_imag = pl.pallas_call(
        _complex_relu_kernel,
        out_shape=(
            jax.ShapeDtypeStruct((rows, lanes), dtype),
            jax.ShapeDtypeStruct((rows, lanes), dtype),
        ),
        grid_spec=pltpu.PrefetchScalarGridSpec(
            num_scalar_prefetch=0,
            grid=grid,
            in_specs=[spec, spec],
            out_specs=[spec, spec],
        ),
        compiler_params=pltpu.CompilerParams(
            dimension_semantics=("parallel",),
            vmem_limit_bytes=vmem_limit,
        ),
    )(real2, imag2)

    return out_real.reshape(orig_shape), out_imag.reshape(orig_shape)


def complex_relu_ref(real, imag):
    mask = (real >= 0).astype(real.dtype)
    return mask * real, mask * imag


def _check(shape, key, dtype=jnp.float32):
    k1, k2 = jax.random.split(key)
    real = jax.random.normal(k1, shape, dtype=dtype)
    imag = jax.random.normal(k2, shape, dtype=dtype)
    out_real, out_imag = complex_relu(real, imag)
    jax.block_until_ready((out_real, out_imag))
    ref_real, ref_imag = complex_relu_ref(real, imag)
    assert out_real.shape == real.shape and out_imag.shape == imag.shape
    assert jnp.allclose(out_real, ref_real), f"real mismatch for {shape}"
    assert jnp.allclose(out_imag, ref_imag), f"imag mismatch for {shape}"


if __name__ == "__main__":
    key = jax.random.PRNGKey(0)
    k1, k2, k3 = jax.random.split(key, 3)

    # Primary small node-feature matrix: 32 nodes, 128 features (tiny path).
    _check((32, 128), k1)
    # Non-128 feature dim + non-divisible row count (fallback lane layout).
    _check((260, 96), k2)
    # Slightly larger graph to exercise the tiled multi-step grid path.
    _check((4096, 256), k3)

    print("KERNEL_OK")
</pallas_src>

<mosaic_0001>
module attributes {stable_mosaic.version = 11 : i64} {
  func.func @_complex_relu_kernel(%arg0: i32, %arg1: memref<2x2048xf32, #tpu.memory_space<vmem>>, %arg2: memref<2x2048xf32, #tpu.memory_space<vmem>>, %arg3: memref<2x2048xf32, #tpu.memory_space<vmem>>, %arg4: memref<2x2048xf32, #tpu.memory_space<vmem>>) attributes {dimension_semantics = [#tpu.dimension_semantics<parallel>], iteration_bounds = array<i64: 1>, scalar_prefetch = 0 : i64, scratch_operands = 0 : i64, tpu.core_type = #tpu.core_type<tc>, window_params = [{transform_indices = @transform_0, window_bounds = array<i64: 2, 2048>}, {transform_indices = @transform_1, window_bounds = array<i64: 2, 2048>}, {transform_indices = @transform_2, window_bounds = array<i64: 2, 2048>}, {transform_indices = @transform_3, window_bounds = array<i64: 2, 2048>}]} {
    %c0 = arith.constant 0 : index
    %c0_0 = arith.constant 0 : index
    %0 = vector.load %arg1[%c0, %c0_0] : memref<2x2048xf32, #tpu.memory_space<vmem>>, vector<2x2048xf32>
    %c0_1 = arith.constant 0 : index
    %c0_2 = arith.constant 0 : index
    %1 = vector.load %arg2[%c0_1, %c0_2] : memref<2x2048xf32, #tpu.memory_space<vmem>>, vector<2x2048xf32>
    %cst = arith.constant 0.000000e+00 : f32
    %2 = vector.broadcast %cst : f32 to vector<2x2048xf32>
    %3 = arith.cmpf oge, %0, %2 : vector<2x2048xf32>
    %4 = arith.extui %3 : vector<2x2048xi1> to vector<2x2048xi32>
    %5 = arith.sitofp %4 : vector<2x2048xi32> to vector<2x2048xf32>
    %6 = arith.mulf %5, %0 : vector<2x2048xf32>
    %c0_3 = arith.constant 0 : index
    %c0_4 = arith.constant 0 : index
    %7 = vector.load %arg3[%c0_3, %c0_4] : memref<2x2048xf32, #tpu.memory_space<vmem>>, vector<2x2048xf32>
    tpu.vector_store %arg3[%c0_3, %c0_4], %6 {strides = array<i32>} : memref<2x2048xf32, #tpu.memory_space<vmem>>, vector<2x2048xf32>,
    %8 = arith.mulf %5, %1 : vector<2x2048xf32>
    %c0_5 = arith.constant 0 : index
    %c0_6 = arith.constant 0 : index
    %9 = vector.load %arg4[%c0_5, %c0_6] : memref<2x2048xf32, #tpu.memory_space<vmem>>, vector<2x2048xf32>
    tpu.vector_store %arg4[%c0_5, %c0_6], %8 {strides = array<i32>} : memref<2x2048xf32, #tpu.memory_space<vmem>>, vector<2x2048xf32>,
    return
  }
  func.func @transform_0(%arg0: i32) -> (i32, i32) {
    %c0_i32 = arith.constant 0 : i32
    %c0_i32_0 = arith.constant 0 : i32
    return %arg0, %c0_i32 : i32, i32
  }
  func.func @transform_1(%arg0: i32) -> (i32, i32) {
    %c0_i32 = arith.constant 0 : i32
    %c0_i32_0 = arith.constant 0 : i32
    return %arg0, %c0_i32 : i32, i32
  }
  func.func @transform_2(%arg0: i32) -> (i32, i32) {
    %c0_i32 = arith.constant 0 : i32
    %c0_i32_0 = arith.constant 0 : i32
    return %arg0, %c0_i32 : i32, i32
  }
  func.func @transform_3(%arg0: i32) -> (i32, i32) {
    %c0_i32 = arith.constant 0 : i32
    %c0_i32_0 = arith.constant 0 : i32
    return %arg0, %c0_i32 : i32, i32
  }
}

</mosaic_0001>

<bundles_post_ra>
// kernel: tpu_custom_call.1
= control target key start
LH: loop header
LB: loop body
LE: loop exit
PB: predicated region body
PF: predicated region fallthrough
CT: control target
= control target key end

     0   :  { %9 = vsyncpa [#allocation3], 0  ;;  %s290_s0 = inlined_call_operand.hbm [shape: f32[2,2048], index: 0, kind: input, shape index: {}]   ;;  %s291_s1 = inlined_call_operand.hbm [shape: f32[2,2048], index: 1, kind: input, shape index: {}]   ;;  %s292_s2 = inlined_call_operand.hbm [shape: f32[2,2048], index: 2, kind: output, shape index: {0}]   ;;  %s293_s3 = inlined_call_operand.hbm [shape: f32[2,2048], index: 3, kind: output, shape index: {1}]  }
   0x1   :  { %10 = vsyncpa [#allocation6], 0 }
   0x2   :  { %11 = vsyncpa [#allocation4], 0 }
   0x3   :  { %12 = vsyncpa [#allocation9], 0  ;;  %s210_s12 = smov [#allocation2]   ;;  %s211_s14 = smov [#allocation5]  }
   0x4   :  { %s19_s13 = sshll.u32 %s210_s12, 4  ;;  %s29_s15 = sshll.u32 %s211_s14, 4  ;;  %s20_s13 = int_to_ptr.vmem [resolvable:$true] %s19_s13  ;;  %s30_s15 = int_to_ptr.vmem [resolvable:$true] %s29_s15 }
   0x5   :  { %s114_s18 = scalar_lea.hbm %s290_s0, 512 }
   0x6   :  { %p115_p0 = scmp.ne.s32.totalorder %s290_s0, %s114_s18  ;;  %p118_p1 = scmp.lt.u32.totalorder %s114_s18, %s290_s0 }
   0x8   :  { %p120_p2 = pnand %p118_p1, %p115_p0 }
   0xa   :  { %123 = shalt.err (!%p120_p2)
}
   0xb   :  { %s124_s23 = scalar_lea.vmem %s20_s13, 512  ;;  %p129_p4 = scmp.lt.s32.totalorder %s20_s13, %s20_s13 }
   0xc   :  { %p125_p3 = scmp.ne.s32.totalorder %s20_s13, %s124_s23  ;;  %p130_p5 = scmp.lt.s32.totalorder %s124_s23, %s124_s23 }
   0xe   :  { %p131_p6 = por %p130_p5, %p129_p4 }
  0x10   :  { %p132_p7 = pnand %p131_p6, %p125_p3 }
  0x12   :  { %135 = shalt.err (!%p132_p7)
}
  0x13   :  { %22 = dma.hbm_to_vmem [thread:$0]  %s290_s0, 512, %s20_s13, [#allocation3]  }
  0x14   :  { %s136_s28 = scalar_lea.hbm %s291_s1, 512 }
  0x15   :  { %p137_p8 = scmp.ne.s32.totalorder %s291_s1, %s136_s28  ;;  %p140_p9 = scmp.lt.u32.totalorder %s136_s28, %s291_s1 }
  0x17   :  { %p142_p10 = pnand %p140_p9, %p137_p8 }
  0x19   :  { %145 = shalt.err (!%p142_p10)
}
  0x1a   :  { %s146_s6 = scalar_lea.vmem %s30_s15, 512  ;;  %p151_p12 = scmp.lt.s32.totalorder %s30_s15, %s30_s15 }
  0x1b   :  { %p147_p11 = scmp.ne.s32.totalorder %s30_s15, %s146_s6  ;;  %p152_p13 = scmp.lt.s32.totalorder %s146_s6, %s146_s6 }
  0x1d   :  { %p153_p0 = por %p152_p13, %p151_p12 }
  0x1f   :  { %p154_p1 = pnand %p153_p0, %p147_p11 }
  0x21   :  { %157 = shalt.err (!%p154_p1)
}
  0x22   :  { %32 = dma.hbm_to_vmem [thread:$0]  %s291_s1, 512, %s30_s15, [#allocation6]  }
  0x23   :  { %202 = dma.done.wait [#allocation3], 512  }
  0x24   :  { %203 = vsyncadd [#allocation3], 4294966784 }
  0x25   :  { %204 = dma.done.wait [#allocation6], 512  }
  0x26   :  { %205 = vsyncadd [#allocation6], 4294966784  ;;  %v39_v0 = vld [vmem:[#allocation2] sm:$0xff]  ;;  %v40_v1 = vld [vmem:[#allocation2 + $0x8] sm:$0xff]  ;;  %s212_s8 = smov [#allocation7]   ;;  %s213_s10 = smov [#allocation8]  }
  0x27   :  { %v41_v2 = vld [vmem:[#allocation2 + $0x10] sm:$0xff]  ;;  %s81_s9 = sshll.u32 %s212_s8, 4  ;;  %s91_s11 = sshll.u32 %s213_s10, 4  ;;  %vm47_vm0 = vcmp.ge.f32.partialorder %v39_v0, 0.0  ;;  %vm48_vm1 = vcmp.ge.f32.partialorder %v40_v1, 0.0  ;;  %v42_v3 = vld [vmem:[#allocation2 + $0x18] sm:$0xff]  ;;  %s82_s9 = int_to_ptr.vmem [resolvable:$true] %s81_s9  ;;  %s259_s11 = int_to_ptr.vmem [resolvable:$true] %s91_s11 }
  0x28   :  { %vm49_vm2 = vcmp.ge.f32.partialorder %v41_v2, 0.0  ;;  %v43_v4 = vld [vmem:[#allocation5] sm:$0xff]  ;;  %v44_v5 = vld [vmem:[#allocation5 + $0x8] sm:$0xff]  ;;  %v214_v6 = vmov 0.0   ;;  %vm50_vm3 = vcmp.ge.f32.partialorder %v42_v3, 0.0  ;;  %v45_v10 = vld [vmem:[#allocation5 + $0x10] sm:$0xff]  ;;  %p163_p3 = scmp.lt.s32.totalorder %s82_s9, %s82_s9 }
  0x29   :  { %v105_v7 = vsel %vm47_vm0, 1.0, %v214_v6  ;;  %v106_v8 = vsel %vm48_vm1, 1.0, %v214_v6  ;;  %v107_v9 = vsel %vm49_vm2, 1.0, %v214_v6  ;;  %v46_v11 = vld [vmem:[#allocation5 + $0x18] sm:$0xff]  ;;  %v108_v15 = vsel %vm50_vm3, 1.0, %v214_v6  ;;  %s158_s1 = scalar_lea.vmem %s82_s9, 512 }
  0x2a   :  { %v59_v12 = vmul.f32 %v105_v7, %v39_v0  ;;  %v60_v13 = vmul.f32 %v106_v8, %v40_v1  ;;  %v61_v14 = vmul.f32 %v107_v9, %v41_v2  ;;  %v62_v16 = vmul.f32 %v108_v15, %v42_v3  ;;  %p159_p2 = scmp.ne.s32.totalorder %s82_s9, %s158_s1  ;;  %p164_p4 = scmp.lt.s32.totalorder %s158_s1, %s158_s1 }
  0x2b   :  { %v67_v17 = vmul.f32 %v105_v7, %v43_v4  ;;  %v68_v18 = vmul.f32 %v106_v8, %v44_v5  ;;  %v69_v19 = vmul.f32 %v107_v9, %v45_v10  ;;  %v70_v20 = vmul.f32 %v108_v15, %v46_v11 }
  0x2c   :  { %63 = vst [vmem:[#allocation7] sm:$0xff] %v59_v12  ;;  %64 = vst [vmem:[#allocation7 + $0x8] sm:$0xff] %v60_v13  ;;  %p165_p5 = por %p164_p4, %p163_p3 }
  0x2d   :  { %65 = vst [vmem:[#allocation7 + $0x10] sm:$0xff] %v61_v14  ;;  %66 = vst [vmem:[#allocation7 + $0x18] sm:$0xff] %v62_v16 }
  0x2e   :  { %71 = vst [vmem:[#allocation8] sm:$0xff] %v67_v17  ;;  %72 = vst [vmem:[#allocation8 + $0x8] sm:$0xff] %v68_v18  ;;  %p166_p6 = pnand %p165_p5, %p159_p2 }
  0x2f   :  { %73 = vst [vmem:[#allocation8 + $0x10] sm:$0xff] %v69_v19  ;;  %74 = vst [vmem:[#allocation8 + $0x18] sm:$0xff] %v70_v20 }
  0x30   :  { %169 = shalt.err (!%p166_p6)
}
  0x31   :  { %s170_s14 = scalar_lea.hbm %s292_s2, 512 }
  0x32   :  { %p171_p7 = scmp.ne.s32.totalorder %s292_s2, %s170_s14  ;;  %p174_p8 = scmp.lt.u32.totalorder %s170_s14, %s292_s2 }
  0x34   :  { %p176_p9 = pnand %p174_p8, %p171_p7 }
  0x36   :  { %179 = shalt.err (!%p176_p9)
}
  0x37   :  { %84 = dma.vmem_to_hbm [thread:$0]  %s82_s9, 512, %s292_s2, [#allocation4]  }
  0x38   :  { %s180_s21 = scalar_lea.vmem %s259_s11, 512  ;;  %p185_p11 = scmp.lt.s32.totalorder %s259_s11, %s259_s11 }
  0x39   :  { %p181_p10 = scmp.ne.s32.totalorder %s259_s11, %s180_s21  ;;  %p186_p12 = scmp.lt.s32.totalorder %s180_s21, %s180_s21 }
  0x3b   :  { %p187_p13 = por %p186_p12, %p185_p11 }
  0x3d   :  { %p188_p0 = pnand %p187_p13, %p181_p10 }
  0x3f   :  { %191 = shalt.err (!%p188_p0)
}
  0x40   :  { %s192_s24 = scalar_lea.hbm %s293_s3, 512 }
  0x41   :  { %p193_p1 = scmp.ne.s32.totalorder %s293_s3, %s192_s24  ;;  %p196_p2 = scmp.lt.u32.totalorder %s192_s24, %s293_s3 }
  0x43   :  { %p198_p3 = pnand %p196_p2, %p193_p1 }
  0x45   :  { %201 = shalt.err (!%p198_p3)
}
  0x46   :  { %94 = dma.vmem_to_hbm [thread:$0]  %s259_s11, 512, %s293_s3, [#allocation9]  }
  0x47   :  { %206 = dma.done.wait [#allocation4], 512  }
  0x48   :  { %207 = vsyncadd [#allocation4], 4294966784 }
  0x49   :  { %208 = dma.done.wait [#allocation9], 512  }
  0x4a   :  { %209 = vsyncadd [#allocation9], 4294966784 }
  0x4b   :  { %101 = vsyncpa [#allocation3], 1 }
  0x4c   :  { %102 = vsyncpa [#allocation6], 1 }
  0x4d   :  { %103 = vsyncpa [#allocation4], 1 }
  0x4e   :  { %104 = vsyncpa [#allocation9], 1 }

</bundles_post_ra>
